<compile_context>
chip_gen: v5e
topology: v5e:2x2
jax: 0.10.0
libtpu: 0.0.40
codegen_flags: <defaults>
</compile_context>

<pallas_src>
import math

import jax
import jax.numpy as jnp
from jax.experimental import pallas as pl
from jax.experimental.pallas import tpu as pltpu


# ---------------------------------------------------------------------------
# Kernel
# ---------------------------------------------------------------------------
def _fusion_kernel(x1_ref, x2_ref, x3_ref, w_ref, b_ref, o_ref):
    # x*_ref : (tr, D)    row tile of each input stream (f32 or bf16)
    # w_ref  : (3*D, 3)   stacked fc1/fc2/fc3 weights (f32, VMEM-resident, un-tiled)
    # b_ref  : (3, 1)     stacked biases               (f32, VMEM-resident, un-tiled)
    # o_ref  : (3, tr)    lane-dense (transposed) sigmoid gates
    d = x1_ref.shape[1]
    # logits = concat(x1,x2,x3) @ W  ==  x1@W[0:D] + x2@W[D:2D] + x3@W[2D:3D]
    # Static slices of the resident weight ref are free views; bf16 activations
    # are promoted to f32 by the dot (weights stay f32 like the PyTorch module).
    acc = jnp.dot(x1_ref[...], w_ref[0:d, :], preferred_element_type=jnp.float32)
    acc = acc + jnp.dot(x2_ref[...], w_ref[d:2 * d, :],
                        preferred_element_type=jnp.float32)
    acc = acc + jnp.dot(x3_ref[...], w_ref[2 * d:3 * d, :],
                        preferred_element_type=jnp.float32)

    # Transpose the narrow (tr, 3) accumulator to the lane-dense (3, tr) layout
    # on the XLU (idle otherwise); bias + sigmoid then touch only ~tr/128 vregs
    # and the store is a full-width unmasked vst.
    z = acc.T + b_ref[...]
    # sigmoid(z) = 0.5 * (tanh(z/2) + 1): tanh runs on the EUP slot (free next
    # to the DMA/MXU work); full-precision, matches the PyTorch sigmoid tightly.
    # (pl.reciprocal(1 + exp(-z), approx=True) is an alternative if a looser
    #  tolerance is acceptable.)
    o_ref[...] = (0.5 * jnp.tanh(0.5 * z) + 0.5).astype(o_ref.dtype)


# ---------------------------------------------------------------------------
# Tiling / VMEM budgeting
# ---------------------------------------------------------------------------
_LANE = 128
_MAX_ROW_TILE = 4096                        # keeps per-step HBM move >> fixed step cost
_PIPELINE_VMEM_BUDGET = 24 * 1024 * 1024    # double-buffered streaming arrays
_VMEM_LIMIT_BYTES = 40 * 1024 * 1024        # scoped VMEM: < 64 MiB (v7x phys), < 128 MiB (v5e/v6e)


def _round_up(x, m):
    return ((x + m - 1) // m) * m


def _pick_row_tile(rows, d, itemsize, budget=_PIPELINE_VMEM_BUDGET):
    """Largest row tile whose pipelined buffers fit the VMEM budget.

    Uses lane-padded widths (the real VMEM footprint) and includes the output
    pipeline buffers.  Multi-tile block heights are multiples of 128 so the
    transposed output block keeps a 128-aligned lane dim.
    """
    d_pad = _round_up(d, _LANE)
    per_row = (3 * 2 * d_pad * itemsize      # x1/x2/x3, 2 pipeline buffers, lane padded
               + 2 * 8 * 4)                  # (3, tr) f32 output block, sublane-padded, 2 buffers
    max_tr = budget // per_row
    max_tr = int(min(max(max_tr, _LANE), _MAX_ROW_TILE))
    max_tr = (max_tr // _LANE) * _LANE
    if rows <= max_tr:
        if rows >= 2 * _LANE:
            # Whole problem would fit in one tile: split into >=2 grid steps so
            # both v7x TensorCores (parallel row axis) get work.
            return _round_up(pl.cdiv(rows, 2), _LANE)
        return rows                          # single tile: block dims == array dims
    return max_tr


# ---------------------------------------------------------------------------
# Wrapper
# ---------------------------------------------------------------------------
def fusion_forward(x1, x2, x3, w_stacked, b_stacked, feature_size):
    """Reproduces fusion.forward.

    x1, x2, x3 : (B, N, feature_size)
    w_stacked  : (3*feature_size, 3)  -- column k is fc{k+1}.weight (transposed)
    b_stacked  : (3,)                 -- fc1/fc2/fc3 biases
    returns (weight1, weight2, weight3), each (B, N, 1), float32
    """
    B, N = x1.shape[0], x1.shape[1]
    D = feature_size
    R = B * N

    # bf16 activations stream through untouched (halves the read traffic); any
    # other dtype is treated as f32.  Weights/bias always stay f32 (matches the
    # PyTorch module's parameters).
    in_dtype = jnp.bfloat16 if x1.dtype == jnp.bfloat16 else jnp.float32
    itemsize = jnp.dtype(in_dtype).itemsize
    granule = 16 if itemsize == 2 else 8

    x1f = x1.reshape(R, D).astype(in_dtype)
    x2f = x2.reshape(R, D).astype(in_dtype)
    x3f = x3.reshape(R, D).astype(in_dtype)

    # Pad the row count to a sublane multiple only for tiny/odd shapes so the
    # single-tile in-kernel transpose always sees aligned shapes.
    R_pad = _round_up(R, granule)
    if R_pad != R:
        pad = ((0, R_pad - R), (0, 0))
        x1f = jnp.pad(x1f, pad)
        x2f = jnp.pad(x2f, pad)
        x3f = jnp.pad(x3f, pad)

    w_f32 = w_stacked.astype(jnp.float32)                # (3D, 3), resident
    b_f32 = b_stacked.reshape(3, 1).astype(jnp.float32)  # (3, 1),  resident

    tr = _pick_row_tile(R_pad, D, itemsize)
    grid = (pl.cdiv(R_pad, tr),)

    row_spec = pl.BlockSpec((tr, D), lambda i: (i, 0))
    # Single un-tiled VMEM-resident copy (no per-step double-buffered weight DMA).
    resident = pl.BlockSpec(memory_space=pltpu.MemorySpace.VMEM)

    cost = pl.CostEstimate(
        flops=2 * R_pad * (3 * D) * 3,
        transcendentals=R_pad * 3,
        bytes_accessed=3 * R_pad * D * itemsize + 3 * D * 3 * 4 + 3 * R_pad * 4,
    )

    out = pl.pallas_call(
        _fusion_kernel,
        out_shape=jax.ShapeDtypeStruct((3, R_pad), jnp.float32),
        grid_spec=pltpu.PrefetchScalarGridSpec(
            num_scalar_prefetch=0,
            grid=grid,
            in_specs=[
                row_spec, row_spec, row_spec,            # x1, x2, x3
                resident,                                # stacked W (3D, 3)
                resident,                                # stacked bias (3, 1)
            ],
            out_specs=pl.BlockSpec((3, tr), lambda i: (0, i)),   # lane-dense output
        ),
        compiler_params=pltpu.CompilerParams(
            dimension_semantics=("parallel",),           # shard row tiles across v7x TCs
            vmem_limit_bytes=_VMEM_LIMIT_BYTES,
        ),
        cost_estimate=cost,
    )(x1f, x2f, x3f, w_f32, b_f32)

    # Contiguous row slices (no strided column gathers).
    weight1 = out[0, :R].reshape(B, N, 1)
    weight2 = out[1, :R].reshape(B, N, 1)
    weight3 = out[2, :R].reshape(B, N, 1)
    return weight1, weight2, weight3


# ---------------------------------------------------------------------------
# Pure-JAX reference (mirrors the PyTorch module: concat + 3 Linears + sigmoid)
# ---------------------------------------------------------------------------
def _reference(x1, x2, x3, w_stacked, b_stacked, D):
    B, N = x1.shape[0], x1.shape[1]
    x123 = jnp.concatenate(
        [x1.reshape(-1, D).astype(jnp.float32),
         x2.reshape(-1, D).astype(jnp.float32),
         x3.reshape(-1, D).astype(jnp.float32)], axis=1)
    logits = x123 @ w_stacked.astype(jnp.float32) + b_stacked.astype(jnp.float32)
    out = jax.nn.sigmoid(logits)
    return (out[:, 0].reshape(B, N, 1),
            out[:, 1].reshape(B, N, 1),
            out[:, 2].reshape(B, N, 1))


if __name__ == "__main__":
    base_key = jax.random.PRNGKey(0)

    def run_case(case_idx, B, N, D, dtype, atol):
        key = jax.random.fold_in(base_key, case_idx)
        k1, k2, k3, kw, kb = jax.random.split(key, 5)
        x1 = jax.random.normal(k1, (B, N, D), dtype=jnp.float32).astype(dtype)
        x2 = jax.random.normal(k2, (B, N, D), dtype=jnp.float32).astype(dtype)
        x3 = jax.random.normal(k3, (B, N, D), dtype=jnp.float32).astype(dtype)

        # torch.nn.Linear-style uniform(-1/sqrt(3D), 1/sqrt(3D)) init.
        bound = 1.0 / math.sqrt(3.0 * D)
        w_stacked = jax.random.uniform(kw, (3 * D, 3), minval=-bound, maxval=bound,
                                       dtype=jnp.float32)
        b_stacked = jax.random.uniform(kb, (3,), minval=-bound, maxval=bound,
                                       dtype=jnp.float32)

        w1o, w2o, w3o = fusion_forward(x1, x2, x3, w_stacked, b_stacked, D)
        jax.block_until_ready((w1o, w2o, w3o))

        r1, r2, r3 = _reference(x1, x2, x3, w_stacked, b_stacked, D)
        assert w1o.shape == (B, N, 1) and w2o.shape == (B, N, 1) and w3o.shape == (B, N, 1)
        assert jnp.allclose(w1o, r1, atol=atol), f"case {case_idx}: weight1 mismatch"
        assert jnp.allclose(w2o, r2, atol=atol), f"case {case_idx}: weight2 mismatch"
        assert jnp.allclose(w3o, r3, atol=atol), f"case {case_idx}: weight3 mismatch"

    # Case 0: tiny, single-tile path (block dims == array dims).
    run_case(0, B=2, N=8, D=32, dtype=jnp.float32, atol=2e-3)
    # Case 1: multi-tile grid with a ragged last tile (R=1200 -> tiles 640+560),
    #         exercises the forced >=2-step split and masked partial writeback.
    run_case(1, B=4, N=300, D=128, dtype=jnp.float32, atol=2e-3)
    # Case 2: bf16 activations (bandwidth path), f32 weights / accumulate / sigmoid.
    run_case(2, B=2, N=8, D=32, dtype=jnp.bfloat16, atol=2e-2)
    # Case 3: the module's real feature size (768) at a tiny row count.
    run_case(3, B=2, N=4, D=768, dtype=jnp.float32, atol=2e-3)

    print("KERNEL_OK")
</pallas_src>

<mosaic_0001>
module attributes {stable_mosaic.version = 11 : i64} {
  func.func @_fusion_kernel(%arg0: i32, %arg1: memref<16x32xf32, #tpu.memory_space<vmem>>, %arg2: memref<16x32xf32, #tpu.memory_space<vmem>>, %arg3: memref<16x32xf32, #tpu.memory_space<vmem>>, %arg4: memref<96x3xf32, #tpu.memory_space<vmem>>, %arg5: memref<3x1xf32, #tpu.memory_space<vmem>>, %arg6: memref<3x16xf32, #tpu.memory_space<vmem>>) attributes {dimension_semantics = [#tpu.dimension_semantics<parallel>], iteration_bounds = array<i64: 1>, scalar_prefetch = 0 : i64, scratch_operands = 0 : i64, tpu.core_type = #tpu.core_type<tc>, window_params = [{transform_indices = @transform_0, window_bounds = array<i64: 16, 32>}, {transform_indices = @transform_1, window_bounds = array<i64: 16, 32>}, {transform_indices = @transform_2, window_bounds = array<i64: 16, 32>}, {pipeline_mode = #tpu.pipeline_mode<synchronous>, transform_indices = @transform_3, window_bounds = array<i64: 96, 3>}, {pipeline_mode = #tpu.pipeline_mode<synchronous>, transform_indices = @transform_4, window_bounds = array<i64: 3, 1>}, {transform_indices = @transform_5, window_bounds = array<i64: 3, 16>}]} {
    %c0 = arith.constant 0 : index
    %c0_0 = arith.constant 0 : index
    %0 = vector.load %arg1[%c0, %c0_0] : memref<16x32xf32, #tpu.memory_space<vmem>>, vector<16x32xf32>
    %c0_1 = arith.constant 0 : index
    %c0_2 = arith.constant 0 : index
    %1 = vector.load %arg4[%c0_1, %c0_2] : memref<96x3xf32, #tpu.memory_space<vmem>>, vector<32x3xf32>
    %cst = arith.constant dense<0.000000e+00> : vector<16x3xf32>
    %2 = tpu.matmul %0, %1, %cst {dimension_numbers = #tpu.dot_dimension_numbers<[1], [0], [0], [1], [0, 0, 1, 1], [], []>} : vector<16x32xf32>, vector<32x3xf32>, vector<16x3xf32> -> vector<16x3xf32>
    %c0_3 = arith.constant 0 : index
    %c0_4 = arith.constant 0 : index
    %3 = vector.load %arg2[%c0_3, %c0_4] : memref<16x32xf32, #tpu.memory_space<vmem>>, vector<16x32xf32>
    %c32 = arith.constant 32 : index
    %c0_5 = arith.constant 0 : index
    %4 = vector.load %arg4[%c32, %c0_5] : memref<96x3xf32, #tpu.memory_space<vmem>>, vector<32x3xf32>
    %cst_6 = arith.constant dense<0.000000e+00> : vector<16x3xf32>
    %5 = tpu.matmul %3, %4, %cst_6 {dimension_numbers = #tpu.dot_dimension_numbers<[1], [0], [0], [1], [0, 0, 1, 1], [], []>} : vector<16x32xf32>, vector<32x3xf32>, vector<16x3xf32> -> vector<16x3xf32>
    %6 = arith.addf %2, %5 : vector<16x3xf32>
    %c0_7 = arith.constant 0 : index
    %c0_8 = arith.constant 0 : index
    %7 = vector.load %arg3[%c0_7, %c0_8] : memref<16x32xf32, #tpu.memory_space<vmem>>, vector<16x32xf32>
    %c64 = arith.constant 64 : index
    %c0_9 = arith.constant 0 : index
    %8 = vector.load %arg4[%c64, %c0_9] : memref<96x3xf32, #tpu.memory_space<vmem>>, vector<32x3xf32>
    %cst_10 = arith.constant dense<0.000000e+00> : vector<16x3xf32>
    %9 = tpu.matmul %7, %8, %cst_10 {dimension_numbers = #tpu.dot_dimension_numbers<[1], [0], [0], [1], [0, 0, 1, 1], [], []>} : vector<16x32xf32>, vector<32x3xf32>, vector<16x3xf32> -> vector<16x3xf32>
    %10 = arith.addf %6, %9 : vector<16x3xf32>
    %11 = tpu.transpose %10, [1, 0] : vector<16x3xf32> -> vector<3x16xf32>
    %c0_11 = arith.constant 0 : index
    %c0_12 = arith.constant 0 : index
    %12 = vector.load %arg5[%c0_11, %c0_12] : memref<3x1xf32, #tpu.memory_space<vmem>>, vector<3x1xf32>
    %13 = vector.broadcast %12 : vector<3x1xf32> to vector<3x16xf32>
    %14 = arith.addf %11, %13 : vector<3x16xf32>
    %cst_13 = arith.constant 5.000000e-01 : f32
    %15 = vector.broadcast %cst_13 : f32 to vector<3x16xf32>
    %16 = arith.mulf %15, %14 : vector<3x16xf32>
    %17 = math.tanh %16 : vector<3x16xf32>
    %cst_14 = arith.constant 5.000000e-01 : f32
    %18 = vector.broadcast %cst_14 : f32 to vector<3x16xf32>
    %19 = arith.mulf %18, %17 : vector<3x16xf32>
    %cst_15 = arith.constant 5.000000e-01 : f32
    %20 = vector.broadcast %cst_15 : f32 to vector<3x16xf32>
    %21 = arith.addf %19, %20 : vector<3x16xf32>
    %c0_16 = arith.constant 0 : index
    %c0_17 = arith.constant 0 : index
    %22 = vector.load %arg6[%c0_16, %c0_17] : memref<3x16xf32, #tpu.memory_space<vmem>>, vector<3x16xf32>
    tpu.vector_store %arg6[%c0_16, %c0_17], %21 {strides = array<i32>} : memref<3x16xf32, #tpu.memory_space<vmem>>, vector<3x16xf32>,
    return
  }
  func.func @transform_0(%arg0: i32) -> (i32, i32) {
    %c0_i32 = arith.constant 0 : i32
    %c0_i32_0 = arith.constant 0 : i32
    return %arg0, %c0_i32 : i32, i32
  }
  func.func @transform_1(%arg0: i32) -> (i32, i32) {
    %c0_i32 = arith.constant 0 : i32
    %c0_i32_0 = arith.constant 0 : i32
    return %arg0, %c0_i32 : i32, i32
  }
  func.func @transform_2(%arg0: i32) -> (i32, i32) {
    %c0_i32 = arith.constant 0 : i32
    %c0_i32_0 = arith.constant 0 : i32
    return %arg0, %c0_i32 : i32, i32
  }
  func.func @transform_3(%arg0: i32) -> (i32, i32) {
    %c0_i32 = arith.constant 0 : i32
    %c0_i32_0 = arith.constant 0 : i32
    %c0_i32_1 = arith.constant 0 : i32
    return %c0_i32, %c0_i32_0 : i32, i32
  }
  func.func @transform_4(%arg0: i32) -> (i32, i32) {
    %c0_i32 = arith.constant 0 : i32
    %c0_i32_0 = arith.constant 0 : i32
    %c0_i32_1 = arith.constant 0 : i32
    return %c0_i32, %c0_i32_0 : i32, i32
  }
  func.func @transform_5(%arg0: i32) -> (i32, i32) {
    %c0_i32 = arith.constant 0 : i32
    %c0_i32_0 = arith.constant 0 : i32
    return %c0_i32, %arg0 : i32, i32
  }
}

</mosaic_0001>

<bundles_post_ra>
// kernel: tpu_custom_call.1
= control target key start
LH: loop header
LB: loop body
LE: loop exit
PB: predicated region body
PF: predicated region fallthrough
CT: control target
= control target key end

     0   :  { %vm33_vm0 = vcmask 261120   ;;  %s330_s0 = inlined_call_operand.vmem [shape: f32[16,32], index: 0, kind: input, shape index: {}]   ;;  %s331_s1 = inlined_call_operand.vmem [shape: f32[16,32], index: 1, kind: input, shape index: {}]   ;;  %s332_s2 = inlined_call_operand.vmem [shape: f32[16,32], index: 2, kind: input, shape index: {}]   ;;  %s333_s3 = inlined_call_operand.vmem [shape: f32[96,3], index: 3, kind: input, shape index: {}]   ;;  %s334_s4 = inlined_call_operand.vmem [shape: f32[3,1], index: 4, kind: input, shape index: {}]   ;;  %s335_s5 = inlined_call_operand.hbm [shape: f32[3,16], index: 5, kind: output, shape index: {}]  }
   0x1   :  { %v97_v0 = vld [vmem:[%s333_s3 + $0x58] sm:$0xff]  ;;  %v96_v1 = vld [vmem:[%s333_s3 + $0x50] sm:$0xff]  ;;  %v95_v5 = vld [vmem:[%s333_s3 + $0x48] sm:$0xff] }
   0x2   :  { %v32_v2 = vld [vmem:[%s333_s3 + $0x38] sm:$0xff]  ;;  %116 = vmatpush.msra.mxu2 %v97_v0  ;;  %v31_v4 = vld [vmem:[%s333_s3 + $0x30] sm:$0xff]  ;;  %v30_v7 = vld [vmem:[%s333_s3 + $0x28] sm:$0xff] }
   0x3   :  { %52 = vmatpush.msra.mxu0 %v32_v2  ;;  %v26_v3 = vld [vmem:[%s333_s3 + $0x18] sm:$0xff]  ;;  %196 = vmatpush.msra.mxu3 %v32_v2  ;;  %v25_v6 = vld [vmem:[%s333_s3 + $0x10] sm:$0xff]  ;;  %v24_v8 = vld [vmem:[%s333_s3 + $0x8] sm:$0xff] }
   0x4   :  { %81 = vmatpush.msra.mxu1 %v26_v3  ;;  %117 = vmatpush.msra.mxu2 %v96_v1  ;;  %v94_v9 = vld [vmem:[%s333_s3 + $0x40] sm:$0xff] }
   0x5   :  { %53 = vmatpush.msra.mxu0 %v31_v4  ;;  %197 = vmatpush.msra.mxu3 %v31_v4  ;;  %v29_v10 = vld [vmem:[%s333_s3 + $0x20] sm:$0xff] }
   0x6   :  { %82 = vmatpush.msra.mxu1 %v25_v6  ;;  %118 = vmatpush.msra.mxu2 %v95_v5  ;;  %v92_v11 = vld [vmem:[%s332_s2] sm:$0xff] }
   0x7   :  { %54 = vmatpush.msra.mxu0 %v30_v7  ;;  %v23_v12 = vld [vmem:[%s333_s3] sm:$0xff]  ;;  %198 = vmatpush.msra.mxu3 %v30_v7 }
   0x8   :  { %83 = vmatpush.msra.mxu1 %v24_v8  ;;  %v27_v13 = vld [vmem:[%s331_s1] sm:$0xff] }
   0x9   :  { %v21_v14 = vld [vmem:[%s330_s0] sm:$0xff] }
   0xa   :  { %10 = vsyncpa [#allocation3], 0  ;;  %119 = vmatpush.msra.mxu2 %v94_v9  ;;  %55 = vmatpush.msra.mxu0 %v29_v10  ;;  %v28_v15 = vld [vmem:[%s331_s1 + $0x8] sm:$0xff]  ;;  %v161_v16 = vld [vmem:[%s334_s4] sm:$0x7]  ;;  %v232_v17 = vmov 0  }
   0xb   :  { %194 = vmatmul.msk.f32.vlgmr.msra.gmra.mxu2 %vm33_vm0, %v92_v11  ;;  %84 = vmatpush.msra.mxu1 %v23_v12  ;;  %v93_v18 = vld [vmem:[%s332_s2 + $0x8] sm:$0xff]  ;;  %s181_s30 = sshll.u32 %s335_s5, 4  ;;  %vm172_vm1 = vcmask 124928   ;;  %s182_s30 = int_to_ptr.hbm [resolvable:$true] %s181_s30 }
   0xc   :  { %190 = vmatmul.msk.f32.vlgmr.msra.gmra.mxu0 %vm33_vm0, %v27_v13  ;;  %192 = vmatmul.msk.f32.vlgmr.msra.gmra.mxu1 %vm33_vm0, %v21_v14  ;;  %v22_v19 = vld [vmem:[%s330_s0 + $0x8] sm:$0xff]  ;;  %s233_s0 = smov [#allocation2]  }
   0xd   :  { %199 = vmatpush.msra.mxu3 %v29_v10  ;;  %203 = vset.pattern.permute.xlu0 %v232_v17  ;;  %s179_s2 = sshll.u32 %s233_s0, 4  ;;  %s180_s2 = int_to_ptr.vmem [resolvable:$true] %s179_s2 }
   0xe   :  { %191 = vmatmul.msk.f32.vlgmr.msra.gmra.mxu3 %vm33_vm0, %v28_v15  ;;  %164 = vperm.xlu0 %203, %v161_v16  }
  0x13   :  { %195 = vmatmul.msk.f32.gmra.mxu2 %vm33_vm0, %v93_v18 }
  0x14   :  { %193 = vmatmul.msk.f32.gmra.mxu1 %vm33_vm0, %v22_v19 }
  0x80   :  { %v165_v30 = vpop.permute.xlu0 %164 }
  0x89   :  { %v57_v20 = vpop.f32.mrf.mxu0  ;;  %v86_v21 = vpop.f32.mrf.mxu1 }
  0x8a   :  { %v87_v22 = vadd.f32 %v86_v21, %v57_v20 }
  0x8e   :  { %v121_v23 = vpop.f32.mrf.mxu2 }
  0x8f   :  { %v127_v24 = vadd.f32 %v121_v23, %v87_v22 }
  0x91   :  { %129 = vxpose.xlu0.b32.start [1/2] (short) (narrow) %v127_v24, 8  ;;  %v60_v25 = vpop.f32.mrf.mxu3  ;;  %v89_v26 = vpop.f32.mrf.mxu1 }
  0x92   :  { %v90_v27 = vadd.f32 %v89_v26, %v60_v25 }
  0x96   :  { %v124_v28 = vpop.f32.mrf.mxu2 }
  0x97   :  { %v128_v29 = vadd.f32 %v124_v28, %v90_v27 }
  0x99   :  { %130 = vxpose.xlu0.b32.end [2/2] (short) (narrow) %v128_v29, 8 }
 0x135   :  { %v145_v31 = vpop.trf.xlu0 }
 0x136   :  { %v167_v32 = vadd.f32 %v165_v30, %v145_v31 }
 0x138   :  { %v168_v33 = vmul.f32 0.5, %v167_v32 }
 0x13a   :  { %204 = vtanh.f32 %v168_v33 }
 0x140   :  { %v205_v34 = vpop.eup %204 }
 0x141   :  { %v170_v35 = vmul.f32 0.5, %v205_v34 }
 0x143   :  { %v171_v36 = vadd.f32 0.5, %v170_v35 }
 0x145   :  { %173 = vst.msk [vmem:[#allocation2] sm:$0x7] %vm172_vm1, %v171_v36 }
 0x146   :  { %184 = dma.vmem_to_hbm [thread:$0]  %s180_s2, 64, %s182_s30, [#allocation3]  }
 0x147   :  { %230 = dma.done.wait [#allocation3], 64  }
 0x148   :  { %231 = vsyncadd [#allocation3], 4294967232 }
 0x149   :  { %189 = vsyncpa [#allocation3], 1 }

</bundles_post_ra>
